<compile_context>
chip_gen: v6e
topology: v6e:2x2x1
jax: 0.10.0
libtpu: 0.0.40
codegen_flags: <defaults>
</compile_context>

<pallas_src>
import functools

import jax
import jax.numpy as jnp
from jax import lax
from jax.experimental import pallas as pl
from jax.experimental.pallas import tpu as pltpu

SIGMA_DATA = 0.5  # EDMScaling(sigma_data=0.5)


# ---------------------------------------------------------------------------
# Pallas kernel: grid = (batch, HW-tile).  Channels-major blocks.
# Refs:
#   sigma_ref : (B,)        SMEM (scalar prefetch)
#   x_ref     : (C, T)      VMEM  -- current batch element (squeezed), HW tile
#   w1t_ref   : (Hid, C)    VMEM
#   b1_ref    : (Hid, 1)    VMEM
#   emb_ref   : (Hid, 1)    VMEM  -- noise embedding direction
#   w2t_ref   : (C, Hid)    VMEM
#   b2_ref    : (C, 1)      VMEM
#   out_ref   : (C, T)      VMEM
# Static (closure): chunk, n_chunks  with chunk * n_chunks == T.
# ---------------------------------------------------------------------------
def denoiser_kernel(sigma_ref, x_ref, w1t_ref, b1_ref, emb_ref, w2t_ref,
                    b2_ref, out_ref, *, chunk, n_chunks):
    b = pl.program_id(0)
    sd2 = jnp.float32(SIGMA_DATA * SIGMA_DATA)

    # Per-batch sigma from SMEM; EDM coefficients computed on one (1,1) vreg.
    sigma = jnp.full((1, 1), sigma_ref[b], dtype=jnp.float32)
    denom = sigma * sigma + sd2                        # sigma^2 + sigma_data^2
    inv = lax.rsqrt(denom)                             # single EUP rsqrt, reused
    c_in = inv
    c_skip = sd2 * inv * inv                           # == sd2 / denom
    c_out = sigma * jnp.float32(SIGMA_DATA) * inv
    # TODO(synk): sigma == 0 gives -inf here, same as the PyTorch reference.
    c_noise = 0.25 * jnp.log(sigma)

    # Once-per-grid-step folds (tiny (Hid,C)/(Hid,1)/(C,Hid)/(C,1) tensors):
    #   layer-1 absorbs c_in, layer-2 absorbs c_out, noise bias folded into b1.
    w1s = w1t_ref[...] * c_in                          # (Hid, C)
    bias = b1_ref[...] + c_noise * emb_ref[...]        # (Hid, 1)
    w2s = w2t_ref[...] * c_out                         # (C, Hid)
    b2s = b2_ref[...] * c_out                          # (C, 1)
    C = w2s.shape[0]

    def _chunk(off):
        xc = x_ref[:, pl.ds(off, chunk)]               # (C, chunk), lane-aligned
        # ----- layer 1 on the VPU: K=C=4 contraction as broadcast-FMA --------
        h = w1s[:, 0:1] * xc[0:1, :]                   # (Hid, chunk)
        for c in range(1, C):
            h = h + w1s[:, c:c + 1] * xc[c:c + 1, :]
        h = jnp.maximum(h + bias, 0.0)                 # noise-conditioned ReLU
        # ----- layer 2 on the MXU (K=Hid=32) ---------------------------------
        net = jnp.dot(w2s, h, preferred_element_type=jnp.float32)   # (C, chunk)
        # ----- Denoiser recombination ----------------------------------------
        out_ref[:, pl.ds(off, chunk)] = net + b2s + xc * c_skip

    if n_chunks == 1:
        _chunk(0)
    else:
        @pl.loop(0, n_chunks)
        def _(ci):
            _chunk(pl.multiple_of(ci * chunk, chunk))


def _round_up(x: int, m: int) -> int:
    return ((x + m - 1) // m) * m


def _pick_tile_hw(hw_padded: int, batch: int, cap: int = 32768) -> int:
    """Largest lane-aligned tile dividing padded HW, capped for VMEM, while
    keeping >= 2 total grid steps (v7x has 2 TensorCores) whenever possible."""
    assert hw_padded % 128 == 0
    k = hw_padded // 128
    divs = [d for d in range(k, 0, -1) if k % d == 0 and 128 * d <= cap]
    if not divs:
        return 128
    for d in divs:
        if batch * (hw_padded // (128 * d)) >= 2:
            return 128 * d
    return 128 * divs[0]   # single-step grid is unavoidable (e.g. B=1, HW=128)


def _pick_chunk(tile_hw: int) -> int:
    for c in (512, 256, 128):
        if tile_hw % c == 0:
            return c
    return tile_hw


# ---------------------------------------------------------------------------
# Wrapper: free NCHW <-> (B, C, HW) reshapes, lane padding, pallas_call.
# ---------------------------------------------------------------------------
@functools.partial(jax.jit, static_argnames=("tile_hw",))
def denoiser_forward(x_nchw, sigma, w1, b1, emb, w2, b2, tile_hw=None):
    B, C, H, W = x_nchw.shape
    HW = H * W
    Hid = w1.shape[1]
    HWp = _round_up(HW, 128)                 # pad -> unmasked, lane-dense stores
    if tile_hw is None:
        tile_hw = _pick_tile_hw(HWp, B)
    assert HWp % tile_hw == 0 and tile_hw % 128 == 0
    nt = HWp // tile_hw
    chunk = _pick_chunk(tile_hw)
    n_chunks = tile_hw // chunk

    # Channels-major, lane-dense views (no transposes of the activations).
    x = x_nchw.reshape(B, C, HW).astype(jnp.float32)
    if HWp != HW:
        x = jnp.pad(x, ((0, 0), (0, 0), (0, HWp - HW)))
    sigma1d = sigma.reshape(B).astype(jnp.float32)

    # Tiny one-time weight re-layouts (done by XLA outside the kernel).
    w1t = jnp.transpose(w1).astype(jnp.float32)        # (Hid, C)
    b1c = b1.reshape(Hid, 1).astype(jnp.float32)       # (Hid, 1)
    embc = emb.reshape(Hid, 1).astype(jnp.float32)     # (Hid, 1)
    w2t = jnp.transpose(w2).astype(jnp.float32)        # (C, Hid)
    b2c = b2.reshape(C, 1).astype(jnp.float32)         # (C, 1)

    cost = pl.CostEstimate(
        flops=4 * B * HWp * C * Hid + 6 * B * HWp * C,
        transcendentals=2 * B * nt,
        bytes_accessed=2 * B * HWp * C * 4 + 4 * (2 * C * Hid + 2 * Hid + C + B),
    )

    # NOTE: weights have constant block index; Pallas skips re-DMA across the
    # grid.  VMEM per step ~ 2 * 2 * C * tile_hw * 4B  (<= ~2 MiB at the cap),
    # well under the 32 MiB scoped limit and v7x's 64 MiB physical VMEM.
    out = pl.pallas_call(
        functools.partial(denoiser_kernel, chunk=chunk, n_chunks=n_chunks),
        out_shape=jax.ShapeDtypeStruct((B, C, HWp), jnp.float32),
        grid_spec=pltpu.PrefetchScalarGridSpec(
            num_scalar_prefetch=1,                     # sigma -> SMEM
            grid=(B, nt),
            in_specs=[
                pl.BlockSpec((None, C, tile_hw), lambda b, t, s: (b, 0, t)),  # x
                pl.BlockSpec((Hid, C), lambda b, t, s: (0, 0)),               # w1^T
                pl.BlockSpec((Hid, 1), lambda b, t, s: (0, 0)),               # b1
                pl.BlockSpec((Hid, 1), lambda b, t, s: (0, 0)),               # emb
                pl.BlockSpec((C, Hid), lambda b, t, s: (0, 0)),               # w2^T
                pl.BlockSpec((C, 1), lambda b, t, s: (0, 0)),                 # b2
            ],
            out_specs=pl.BlockSpec((None, C, tile_hw), lambda b, t, s: (b, 0, t)),
        ),
        compiler_params=pltpu.CompilerParams(
            dimension_semantics=("parallel", "parallel"),
            vmem_limit_bytes=32 * 1024 * 1024,
        ),
        cost_estimate=cost,
    )(sigma1d, x, w1t, b1c, embc, w2t, b2c)

    if HWp != HW:
        out = out[:, :, :HW]
    return out.reshape(B, C, H, W)                     # free reshape back to NCHW


# ---------------------------------------------------------------------------
# Pure-JAX reference (mirrors the PyTorch forward exactly)
# ---------------------------------------------------------------------------
def denoiser_reference(x_nchw, sigma, w1, b1, emb, w2, b2):
    B, C, H, W = x_nchw.shape
    s = sigma.reshape(B, 1, 1, 1).astype(jnp.float32)    # append_dims(sigma, 4)
    sd2 = SIGMA_DATA * SIGMA_DATA
    denom = s * s + sd2
    c_skip = sd2 / denom
    c_out = s * SIGMA_DATA / jnp.sqrt(denom)
    c_in = 1.0 / jnp.sqrt(denom)
    c_noise = 0.25 * jnp.log(sigma.astype(jnp.float32))   # reshape(sigma_shape)

    x_in = x_nchw * c_in                                   # NCHW
    x_in_cl = jnp.transpose(x_in, (0, 2, 3, 1)).reshape(B, H * W, C)
    h = x_in_cl @ w1 + b1 + c_noise[:, None, None] * emb   # (B, HW, Hid)
    h = jnp.maximum(h, 0.0)
    net = h @ w2 + b2                                      # (B, HW, C)
    net_nchw = jnp.transpose(net.reshape(B, H, W, C), (0, 3, 1, 2))
    return net_nchw * c_out + x_nchw * c_skip


def _check(x, sigma, w1, b1, emb, w2, b2, **kw):
    out = jax.block_until_ready(denoiser_forward(x, sigma, w1, b1, emb, w2, b2, **kw))
    ref = denoiser_reference(x, sigma, w1, b1, emb, w2, b2)
    assert out.shape == x.shape
    err = float(jnp.max(jnp.abs(out - ref)))
    assert jnp.allclose(out, ref, atol=1e-4, rtol=1e-4), err


if __name__ == "__main__":
    C, HID = 4, 32
    key = jax.random.PRNGKey(0)
    kx, ks, kw1, kb1, kemb, kw2, kb2 = jax.random.split(key, 7)

    # Deterministic synthetic "network" parameters (pointwise MLP).
    w1 = jax.random.normal(kw1, (C, HID), dtype=jnp.float32) * 0.2
    b1 = jax.random.normal(kb1, (1, HID), dtype=jnp.float32) * 0.05
    emb = jax.random.normal(kemb, (1, HID), dtype=jnp.float32) * 0.1
    w2 = jax.random.normal(kw2, (HID, C), dtype=jnp.float32) * 0.2
    b2 = jax.random.normal(kb2, (1, C), dtype=jnp.float32) * 0.05

    # 1) Primary small-shape check: B=2, 16x16 -> grid (2, 1), single chunk.
    B, H, W = 2, 16, 16
    x = jax.random.normal(kx, (B, C, H, W), dtype=jnp.float32)
    sigma = jax.random.uniform(ks, (B,), dtype=jnp.float32, minval=0.1, maxval=2.0)
    _check(x, sigma, w1, b1, emb, w2, b2)

    # 2) B=1 exercises the v7x >=2-grid-step guard and the multi-chunk loop
    #    (HW=2048 -> tile 1024, chunk 512, 2 chunks, grid (1, 2)).
    x1 = jax.random.normal(jax.random.PRNGKey(1), (1, C, 32, 64), dtype=jnp.float32)
    s1 = jax.random.uniform(jax.random.PRNGKey(2), (1,), dtype=jnp.float32,
                            minval=0.1, maxval=2.0)
    _check(x1, s1, w1, b1, emb, w2, b2)

    # 3) HW not divisible by 128 exercises the lane-padding path (100 -> 128).
    x2 = jax.random.normal(jax.random.PRNGKey(3), (2, C, 10, 10), dtype=jnp.float32)
    s2 = jax.random.uniform(jax.random.PRNGKey(4), (2,), dtype=jnp.float32,
                            minval=0.1, maxval=2.0)
    _check(x2, s2, w1, b1, emb, w2, b2)

    print("KERNEL_OK")
</pallas_src>

<mosaic_0001>
module attributes {stable_mosaic.version = 11 : i64} {
  func.func @denoiser_kernel(%arg0: i32, %arg1: i32, %arg2: memref<2xf32, #tpu.memory_space<smem>>, %arg3: memref<1x4x256xf32, #tpu.memory_space<vmem>>, %arg4: memref<32x4xf32, #tpu.memory_space<vmem>>, %arg5: memref<32x1xf32, #tpu.memory_space<vmem>>, %arg6: memref<32x1xf32, #tpu.memory_space<vmem>>, %arg7: memref<4x32xf32, #tpu.memory_space<vmem>>, %arg8: memref<4x1xf32, #tpu.memory_space<vmem>>, %arg9: memref<1x4x256xf32, #tpu.memory_space<vmem>>) attributes {dimension_semantics = [#tpu.dimension_semantics<parallel>, #tpu.dimension_semantics<parallel>], iteration_bounds = array<i64: 2, 1>, scalar_prefetch = 1 : i64, scratch_operands = 0 : i64, tpu.core_type = #tpu.core_type<tc>, window_params = [{transform_indices = @transform_0, window_bounds = array<i64: 1, 4, 256>}, {pipeline_mode = #tpu.pipeline_mode<synchronous>, transform_indices = @transform_1, window_bounds = array<i64: 32, 4>}, {pipeline_mode = #tpu.pipeline_mode<synchronous>, transform_indices = @transform_2, window_bounds = array<i64: 32, 1>}, {pipeline_mode = #tpu.pipeline_mode<synchronous>, transform_indices = @transform_3, window_bounds = array<i64: 32, 1>}, {pipeline_mode = #tpu.pipeline_mode<synchronous>, transform_indices = @transform_4, window_bounds = array<i64: 4, 32>}, {pipeline_mode = #tpu.pipeline_mode<synchronous>, transform_indices = @transform_5, window_bounds = array<i64: 4, 1>}, {transform_indices = @transform_6, window_bounds = array<i64: 1, 4, 256>}]} {
    %0 = arith.index_cast %arg0 : i32 to index
    %1 = memref.load %arg2[%0] : memref<2xf32, #tpu.memory_space<smem>>
    %2 = vector.broadcast %1 : f32 to vector<1x1xf32>
    %3 = arith.mulf %2, %2 : vector<1x1xf32>
    %cst = arith.constant 2.500000e-01 : f32
    %4 = vector.broadcast %cst : f32 to vector<1x1xf32>
    %5 = arith.addf %3, %4 : vector<1x1xf32>
    %6 = math.rsqrt %5 : vector<1x1xf32>
    %cst_0 = arith.constant 2.500000e-01 : f32
    %7 = vector.broadcast %cst_0 : f32 to vector<1x1xf32>
    %8 = arith.mulf %7, %6 : vector<1x1xf32>
    %9 = arith.mulf %8, %6 : vector<1x1xf32>
    %cst_1 = arith.constant 5.000000e-01 : f32
    %10 = vector.broadcast %cst_1 : f32 to vector<1x1xf32>
    %11 = arith.mulf %2, %10 : vector<1x1xf32>
    %12 = arith.mulf %11, %6 : vector<1x1xf32>
    %13 = math.log %2 : vector<1x1xf32>
    %cst_2 = arith.constant 2.500000e-01 : f32
    %14 = vector.broadcast %cst_2 : f32 to vector<1x1xf32>
    %15 = arith.mulf %14, %13 : vector<1x1xf32>
    %c0 = arith.constant 0 : index
    %c0_3 = arith.constant 0 : index
    %16 = vector.load %arg4[%c0, %c0_3] : memref<32x4xf32, #tpu.memory_space<vmem>>, vector<32x4xf32>
    %17 = vector.broadcast %6 : vector<1x1xf32> to vector<32x4xf32>
    %18 = arith.mulf %16, %17 : vector<32x4xf32>
    %c0_4 = arith.constant 0 : index
    %c0_5 = arith.constant 0 : index
    %19 = vector.load %arg5[%c0_4, %c0_5] : memref<32x1xf32, #tpu.memory_space<vmem>>, vector<32x1xf32>
    %c0_6 = arith.constant 0 : index
    %c0_7 = arith.constant 0 : index
    %20 = vector.load %arg6[%c0_6, %c0_7] : memref<32x1xf32, #tpu.memory_space<vmem>>, vector<32x1xf32>
    %21 = vector.broadcast %15 : vector<1x1xf32> to vector<32x1xf32>
    %22 = arith.mulf %21, %20 : vector<32x1xf32>
    %23 = arith.addf %19, %22 : vector<32x1xf32>
    %c0_8 = arith.constant 0 : index
    %c0_9 = arith.constant 0 : index
    %24 = vector.load %arg7[%c0_8, %c0_9] : memref<4x32xf32, #tpu.memory_space<vmem>>, vector<4x32xf32>
    %25 = vector.broadcast %12 : vector<1x1xf32> to vector<4x32xf32>
    %26 = arith.mulf %24, %25 : vector<4x32xf32>
    %c0_10 = arith.constant 0 : index
    %c0_11 = arith.constant 0 : index
    %27 = vector.load %arg8[%c0_10, %c0_11] : memref<4x1xf32, #tpu.memory_space<vmem>>, vector<4x1xf32>
    %28 = vector.broadcast %12 : vector<1x1xf32> to vector<4x1xf32>
    %29 = arith.mulf %27, %28 : vector<4x1xf32>
    %c0_12 = arith.constant 0 : index
    %c0_13 = arith.constant 0 : index
    %c0_14 = arith.constant 0 : index
    %30 = vector.load %arg3[%c0_12, %c0_13, %c0_14] : memref<1x4x256xf32, #tpu.memory_space<vmem>>, vector<1x4x256xf32>
    %31 = vector.shape_cast %30 : vector<1x4x256xf32> to vector<4x256xf32>
    %32 = vector.extract_strided_slice %18 {offsets = [0, 0], sizes = [32, 1], strides = [1, 1]} : vector<32x4xf32> to vector<32x1xf32>
    %33 = vector.extract_strided_slice %31 {offsets = [0, 0], sizes = [1, 256], strides = [1, 1]} : vector<4x256xf32> to vector<1x256xf32>
    %34 = vector.broadcast %32 : vector<32x1xf32> to vector<32x256xf32>
    %35 = vector.broadcast %33 : vector<1x256xf32> to vector<32x256xf32>
    %36 = arith.mulf %34, %35 : vector<32x256xf32>
    %37 = vector.extract_strided_slice %18 {offsets = [0, 1], sizes = [32, 1], strides = [1, 1]} : vector<32x4xf32> to vector<32x1xf32>
    %38 = vector.extract_strided_slice %31 {offsets = [1, 0], sizes = [1, 256], strides = [1, 1]} : vector<4x256xf32> to vector<1x256xf32>
    %39 = vector.broadcast %37 : vector<32x1xf32> to vector<32x256xf32>
    %40 = vector.broadcast %38 : vector<1x256xf32> to vector<32x256xf32>
    %41 = arith.mulf %39, %40 : vector<32x256xf32>
    %42 = arith.addf %36, %41 : vector<32x256xf32>
    %43 = vector.extract_strided_slice %18 {offsets = [0, 2], sizes = [32, 1], strides = [1, 1]} : vector<32x4xf32> to vector<32x1xf32>
    %44 = vector.extract_strided_slice %31 {offsets = [2, 0], sizes = [1, 256], strides = [1, 1]} : vector<4x256xf32> to vector<1x256xf32>
    %45 = vector.broadcast %43 : vector<32x1xf32> to vector<32x256xf32>
    %46 = vector.broadcast %44 : vector<1x256xf32> to vector<32x256xf32>
    %47 = arith.mulf %45, %46 : vector<32x256xf32>
    %48 = arith.addf %42, %47 : vector<32x256xf32>
    %49 = vector.extract_strided_slice %18 {offsets = [0, 3], sizes = [32, 1], strides = [1, 1]} : vector<32x4xf32> to vector<32x1xf32>
    %50 = vector.extract_strided_slice %31 {offsets = [3, 0], sizes = [1, 256], strides = [1, 1]} : vector<4x256xf32> to vector<1x256xf32>
    %51 = vector.broadcast %49 : vector<32x1xf32> to vector<32x256xf32>
    %52 = vector.broadcast %50 : vector<1x256xf32> to vector<32x256xf32>
    %53 = arith.mulf %51, %52 : vector<32x256xf32>
    %54 = arith.addf %48, %53 : vector<32x256xf32>
    %55 = vector.broadcast %23 : vector<32x1xf32> to vector<32x256xf32>
    %56 = arith.addf %54, %55 : vector<32x256xf32>
    %cst_15 = arith.constant 0.000000e+00 : f32
    %57 = vector.broadcast %cst_15 : f32 to vector<32x256xf32>
    %58 = arith.maximumf %56, %57 : vector<32x256xf32>
    %cst_16 = arith.constant dense<0.000000e+00> : vector<4x256xf32>
    %59 = tpu.matmul %26, %58, %cst_16 {dimension_numbers = #tpu.dot_dimension_numbers<[1], [0], [0], [1], [0, 0, 1, 1], [], []>} : vector<4x32xf32>, vector<32x256xf32>, vector<4x256xf32> -> vector<4x256xf32>
    %60 = vector.broadcast %29 : vector<4x1xf32> to vector<4x256xf32>
    %61 = arith.addf %59, %60 : vector<4x256xf32>
    %62 = vector.broadcast %9 : vector<1x1xf32> to vector<4x256xf32>
    %63 = arith.mulf %31, %62 : vector<4x256xf32>
    %64 = arith.addf %61, %63 : vector<4x256xf32>
    %c0_17 = arith.constant 0 : index
    %c0_18 = arith.constant 0 : index
    %c0_19 = arith.constant 0 : index
    %65 = vector.load %arg9[%c0_17, %c0_18, %c0_19] : memref<1x4x256xf32, #tpu.memory_space<vmem>>, vector<1x4x256xf32>
    %66 = vector.shape_cast %65 : vector<1x4x256xf32> to vector<4x256xf32>
    %67 = vector.shape_cast %64 : vector<4x256xf32> to vector<1x4x256xf32>
    tpu.vector_store %arg9[%c0_17, %c0_18, %c0_19], %67 {strides = array<i32>} : memref<1x4x256xf32, #tpu.memory_space<vmem>>, vector<1x4x256xf32>,
    return
  }
  func.func @transform_0(%arg0: i32, %arg1: i32, %arg2: memref<2xf32, #tpu.memory_space<smem>>) -> (i32, i32, i32) {
    %c0_i32 = arith.constant 0 : i32
    %c0_i32_0 = arith.constant 0 : i32
    return %arg0, %c0_i32, %arg1 : i32, i32, i32
  }
  func.func @transform_1(%arg0: i32, %arg1: i32, %arg2: memref<2xf32, #tpu.memory_space<smem>>) -> (i32, i32) {
    %c0_i32 = arith.constant 0 : i32
    %c0_i32_0 = arith.constant 0 : i32
    %c0_i32_1 = arith.constant 0 : i32
    return %c0_i32, %c0_i32_0 : i32, i32
  }
  func.func @transform_2(%arg0: i32, %arg1: i32, %arg2: memref<2xf32, #tpu.memory_space<smem>>) -> (i32, i32) {
    %c0_i32 = arith.constant 0 : i32
    %c0_i32_0 = arith.constant 0 : i32
    %c0_i32_1 = arith.constant 0 : i32
    return %c0_i32, %c0_i32_0 : i32, i32
  }
  func.func @transform_3(%arg0: i32, %arg1: i32, %arg2: memref<2xf32, #tpu.memory_space<smem>>) -> (i32, i32) {
    %c0_i32 = arith.constant 0 : i32
    %c0_i32_0 = arith.constant 0 : i32
    %c0_i32_1 = arith.constant 0 : i32
    return %c0_i32, %c0_i32_0 : i32, i32
  }
  func.func @transform_4(%arg0: i32, %arg1: i32, %arg2: memref<2xf32, #tpu.memory_space<smem>>) -> (i32, i32) {
    %c0_i32 = arith.constant 0 : i32
    %c0_i32_0 = arith.constant 0 : i32
    %c0_i32_1 = arith.constant 0 : i32
    return %c0_i32, %c0_i32_0 : i32, i32
  }
  func.func @transform_5(%arg0: i32, %arg1: i32, %arg2: memref<2xf32, #tpu.memory_space<smem>>) -> (i32, i32) {
    %c0_i32 = arith.constant 0 : i32
    %c0_i32_0 = arith.constant 0 : i32
    %c0_i32_1 = arith.constant 0 : i32
    return %c0_i32, %c0_i32_0 : i32, i32
  }
  func.func @transform_6(%arg0: i32, %arg1: i32, %arg2: memref<2xf32, #tpu.memory_space<smem>>) -> (i32, i32, i32) {
    %c0_i32 = arith.constant 0 : i32
    %c0_i32_0 = arith.constant 0 : i32
    return %arg0, %c0_i32, %arg1 : i32, i32, i32
  }
}

</mosaic_0001>

<bundles_post_ra>
// kernel: denoiser_forward.1
= control target key start
LH: loop header
LB: loop body
LE: loop exit
PB: predicated region body
PF: predicated region fallthrough
CT: control target
= control target key end

     0   :  { %s1047_s0 = inlined_call_operand.vmem [shape: f32[2], index: 0, kind: input, shape index: {}]   ;;  %s1048_s1 = inlined_call_operand.vmem [shape: f32[2,4,256], index: 1, kind: input, shape index: {}]   ;;  %s1049_s2 = inlined_call_operand.vmem [shape: f32[32,4], index: 2, kind: input, shape index: {}]   ;;  %s1050_s3 = inlined_call_operand.vmem [shape: f32[32,1], index: 3, kind: input, shape index: {}]   ;;  %s1051_s4 = inlined_call_operand.vmem [shape: f32[32,1], index: 4, kind: input, shape index: {}]   ;;  %s1052_s5 = inlined_call_operand.vmem [shape: f32[4,32], index: 5, kind: input, shape index: {}]   ;;  %s1053_s6 = inlined_call_operand.vmem [shape: f32[4,1], index: 6, kind: input, shape index: {}]   ;;  %s1054_s7 = inlined_call_operand.vmem [shape: f32[2,4,256], index: 7, kind: output, shape index: {}]  }
   0x1   :  { %s12_s26 = sshll.u32 %s1047_s0, 4  ;;  %s13_s26 = int_to_ptr.vmem [resolvable:$true] %s12_s26 }
   0x2   :  { %s816_s27 = scalar_lea.vmem %s13_s26, 16  ;;  %p821_p1 = scmp.lt.s32.totalorder %s13_s26, %s13_s26 }
   0x3   :  { %p817_p0 = scmp.ne.s32.totalorder %s13_s26, %s816_s27  ;;  %p822_p2 = scmp.lt.s32.totalorder %s816_s27, %s816_s27 }
   0x5   :  { %p823_p3 = por %p822_p2, %p821_p1 }
   0x7   :  { %p824_p4 = pnand %p823_p3, %p817_p0 }
   0x9   :  { %827 = shalt.err (!%p824_p4)  }
   0xa   :  { %s854_s28 = smov [#allocation3]  }
   0xb   :  { %15 = dma.vmem_to_smem %s13_s26, 16, %s854_s28, [#allocation2] }
   0xc   :  { %840 = dma.done.wait [#allocation2], 16 }
   0xd   :  { %841 = vsyncadd [#allocation2], 4294967280 }
   0xe   :  { %17 = sfence }
   0xf   :  { %s903_s29 = smov 0   ;;  %s905_s30 = smov 0  }
  0x10   :  { %s907_s8 = smov 0  }
  0x11 LB: > { %s35_s0 = sadd.s32 1, %s848_s30  ;;  %p754_p5 = scmp.ge.s32.totalorder %s852_s8, 1  ;;  %s852_s8 = sphi %s907_s8, %s23_s8   ;;  %s848_s30 = sphi %s905_s30, %s1056_s30   ;;  %s844_s29 = sphi %s903_s29, %s1055_s29  }
  0x12   : > { %p37_p6 = scmp.ge.s32.totalorder %s35_s0, 2  ;;  %p240_p7 = scmp.lt.s32.totalorder %s852_s8, 3 }
  0x14   : > { %s1058_s0 = smov (%p37_p6, %s35_s0), 0  ;;  %p241_p8 = pnand %p754_p5, %p240_p7 }
  0x15   : > { %s298_s9 = sld [smem:[#allocation3 + %s844_s29]] (!%p241_p8)  ;;  %p279_p9 = scmp.lt.s32.totalorder (!%p241_p8), %s844_s29, 1 }
  0x16   : > { %244 = sbr.rel (%p241_p8) target bundleno = 439 (0x1b7), region = 44 }
  0x1b   : > { %v855_v0 = vmov 0   ;;  %v299_v1 = vstv %s298_s9  ;;  %v313_v4 = vld [vmem:[%s1049_s2 + $0x18] sm:$0xff]  ;;  %v312_v5 = vld [vmem:[%s1049_s2 + $0x10] sm:$0xff]  ;;  %v311_v9 = vld [vmem:[%s1049_s2 + $0x8] sm:$0xff]  ;;  %v856_v10 = vmov 1   ;;  %v857_v12 = vmov 2  }
  0x1c   : > { %796 = vset.pattern.permute.xlu1 %v855_v0  ;;  %794 = vset.pattern.permute.xlu0 %v855_v0  ;;  %v300_v2 = vmul.f32 %v299_v1, %v299_v1  ;;  %v310_v16 = vld [vmem:[%s1049_s2] sm:$0xff]  ;;  %v324_v17 = vld [vmem:[%s1051_s4 + $0x10] sm:$0xff]  ;;  %v858_v18 = vmov 3   ;;  %v305_v21 = vmul.f32 0.5, %v299_v1  ;;  %v325_v27 = vld [vmem:[%s1051_s4 + $0x18] sm:$0xff]  ;;  %v859_v39 = vmov 0.0  }
  0x1d   : > { %v320_v22 = vld [vmem:[%s1050_s3 + $0x10] sm:$0xff]  ;;  %v336_v25 = vld [vmem:[%s1053_s6] sm:$0xf]  ;;  %v321_v29 = vld [vmem:[%s1050_s3 + $0x18] sm:$0xff]  ;;  %645 = vmatprep.mubr.f32.mxu0 %v859_v39  ;;  %s1060_s29 = smov (!%p279_p9, %s844_s29), 1  ;;  %v360_v44 = vlaneseq  ;;  %vm577_vm0 = vcmask 261120  }
  0x1e   : > { %v301_v3 = vadd.f32 0.25, %v300_v2  ;;  %v323_v31 = vld [vmem:[%s1051_s4 + $0x8] sm:$0xff]  ;;  %v322_v34 = vld [vmem:[%s1051_s4] sm:$0xff]  ;;  %s762_s16 = sshll.u32 %s1060_s29, 3 }
  0x1f   : > { %v319_v33 = vld [vmem:[%s1050_s3 + $0x8] sm:$0xff]  ;;  %v318_v37 = vld [vmem:[%s1050_s3] sm:$0xff]  ;;  %v361_v47 = vshrl.u32 %v360_v44, 7  ;;  %s286_s19 = scalar_lea.vmem %s1048_s1, %s762_s16  ;;  %s296_s24 = scalar_lea.vmem %s1054_s7, %s762_s16 }
  0x20   : > { %812 = vrsqrt.f32 %v301_v3  ;;  %v992_v54 = vld [vmem:[%s286_s19] sm:$0xff] }
  0x21   : > { %814 = vlog2.f32 %v299_v1  ;;  %v408_v49 = vsub.s32 5, %v361_v47  ;;  %v362_v51 = vsub.s32 0, %v361_v47  ;;  %v366_v52 = vsub.s32 4, %v361_v47 }
  0x22   : > { %v404_v53 = vsub.s32 1, %v361_v47  ;;  %v454_v57 = vsub.s32 2, %v361_v47  ;;  %v458_v58 = vsub.s32 6, %v361_v47  ;;  %v504_v63 = vsub.s32 3, %v361_v47 }
  0x23   : > { %v409_v55 = vrot.slane %v992_v54, %v408_v49  ;;  %v363_v59 = vrot.slane %v992_v54, %v362_v51  ;;  %v367_v60 = vrot.slane %v992_v54, %v366_v52 }
  0x24   : > { %v405_v61 = vrot.slane %v992_v54, %v404_v53  ;;  %v455_v2 = vrot.slane %v992_v54, %v454_v57  ;;  %v459_v3 = vrot.slane %v992_v54, %v458_v58 }
  0x25   : > { %v1000_v1 = vrot.slane %v409_v55, %v404_v53 }
  0x2d   : > { %v932_v6 = vpop.eup %812 }
  0x2e   : > { %v317_v7 = vmul.f32 %v932_v6, %v313_v4  ;;  %v316_v8 = vmul.f32 %v932_v6, %v312_v5  ;;  %v315_v11 = vmul.f32 %v932_v6, %v311_v9  ;;  %v815_v13 = vpop.eup %814  ;;  %v314_v19 = vmul.f32 %v932_v6, %v310_v16 }
  0x2f   : > { %v308_v14 = vmul.f32 0.6931472, %v815_v13  ;;  %v953_v24 = vmul.f32 %v932_v6, %v305_v21  ;;  %v1004_v5 = vrot.slane %v363_v59, %v362_v51  ;;  %v505_v9 = vrot.slane %v992_v54, %v504_v63 }
  0x30   : > { %356 = vperm.xlu0 %794, %v317_v7   ;;  %351 = vperm.xlu1 %796, %v316_v8  }
  0x31   : > { %v309_v15 = vmul.f32 0.25, %v308_v14  ;;  %v337_v26 = vmul.f32 %v336_v25, %v953_v24 }
  0x33   : > { %v328_v20 = vmul.f32 %v324_v17, %v309_v15  ;;  %v329_v28 = vmul.f32 %v325_v27, %v309_v15  ;;  %v327_v32 = vmul.f32 %v323_v31, %v309_v15  ;;  %v326_v36 = vmul.f32 %v322_v34, %v309_v15 }
  0x34   : > { %795 = vset.pattern.permute.xlu0 %v856_v10  ;;  %797 = vset.pattern.permute.xlu1 %v856_v10  ;;  %v465_v17 = vrot.slane %v455_v2, %v454_v57 }
  0x35   : > { %399 = vperm.xlu0 %795, %v317_v7   ;;  %395 = vperm.xlu1 %797, %v316_v8   ;;  %v332_v23 = vadd.f32 %v328_v20, %v320_v22  ;;  %v333_v30 = vadd.f32 %v329_v28, %v321_v29  ;;  %v331_v35 = vadd.f32 %v327_v32, %v319_v33 }
  0x36   : > { %v330_v38 = vadd.f32 %v326_v36, %v318_v37 }
  0x39   : > { %799 = vset.pattern.permute.xlu0 %v855_v0  ;;  %798 = vset.pattern.permute.xlu1 %v857_v12 }
  0x3a   : > { %449 = vperm.xlu1 %798, %v317_v7   ;;  %346 = vperm.xlu0 %799, %v315_v11  }
  0x3e   : > { %800 = vset.pattern.permute.xlu1 %v856_v10  ;;  %804 = vset.pattern.permute.xlu0 %v857_v12 }
  0x3f   : > { %391 = vperm.xlu1 %800, %v315_v11   ;;  %441 = vperm.xlu0 %804, %v315_v11  }
  0x43   : > { %801 = vset.pattern.permute.xlu1 %v857_v12  ;;  %805 = vset.pattern.permute.xlu0 %v858_v18 }
  0x44   : > { %445 = vperm.xlu1 %801, %v316_v8   ;;  %499 = vperm.xlu0 %805, %v317_v7   ;;  %v1006_v7 = vrot.slane %v367_v60, %v362_v51 }
  0x48   : > { %802 = vset.pattern.permute.xlu1 %v855_v0  ;;  %491 = vperm.xlu0 %805, %v315_v11  }
  0x49   : > { %341 = vperm.xlu1 %802, %v314_v19  }
  0x4c   : > { %810 = vset.pattern.permute.xlu0 %v855_v0 }
  0x4d   : > { %803 = vset.pattern.permute.xlu1 %v856_v10  ;;  %548 = vperm.xlu0 %810, %v332_v23   ;;  %v515_v23 = vrot.slane %v505_v9, %v504_v63 }
  0x4e   : > { %387 = vperm.xlu1 %803, %v314_v19  }
  0x51   : > { %574 = vperm.xlu0 %810, %v337_v26  }
  0x52   : > { %806 = vset.pattern.permute.xlu1 %v858_v18 }
  0x53   : > { %495 = vperm.xlu1 %806, %v316_v8   ;;  %v415_v8 = vrot.slane %v405_v61, %v404_v53 }
  0x57   : > { %807 = vset.pattern.permute.xlu1 %v857_v12 }
  0x58   : > { %437 = vperm.xlu1 %807, %v314_v19  }
  0x5c   : > { %808 = vset.pattern.permute.xlu1 %v855_v0 }
  0x5d   : > { %553 = vperm.xlu1 %808, %v333_v30  }
  0x61   : > { %809 = vset.pattern.permute.xlu1 %v858_v18  ;;  %v469_v18 = vrot.slane %v459_v3, %v454_v57 }
  0x62   : > { %487 = vperm.xlu1 %809, %v314_v19  }
  0x66   : > { %811 = vset.pattern.permute.xlu1 %v855_v0  ;;  %v508_v0 = vsub.s32 7, %v361_v47 }
  0x67   : > { %543 = vperm.xlu1 %811, %v331_v35  }
  0x68   : > { %v509_v10 = vrot.slane %v992_v54, %v508_v0 }
  0x6a   : > { %v519_v25 = vrot.slane %v509_v10, %v504_v63 }
  0x6b   : > { %538 = vperm.xlu1 %811, %v330_v38  }
  0xab   : > { %v352_v40 = vpop.permute.xlu1 %351  ;;  %v357_v42 = vpop.permute.xlu0 %356 }
  0xac   : > { %v384_v11 = vmul.f32 %v1004_v5, %v357_v42  ;;  %v385_v15 = vmul.f32 %v1006_v7, %v357_v42  ;;  %v383_v19 = vmul.f32 %v1006_v7, %v352_v40  ;;  %v382_v26 = vmul.f32 %v1004_v5, %v352_v40 }
  0xb0   : > { %v396_v41 = vpop.permute.xlu1 %395  ;;  %v400_v45 = vpop.permute.xlu0 %399 }
  0xb1   : > { %v425_v12 = vmul.f32 %v1000_v1, %v396_v41  ;;  %v426_v13 = vmul.f32 %v415_v8, %v400_v45  ;;  %v427_v16 = vmul.f32 %v1000_v1, %v400_v45  ;;  %v424_v20 = vmul.f32 %v415_v8, %v396_v41 }
  0xb3   : > { %v433_v27 = vadd.f32 %v425_v12, %v383_v19  ;;  %v434_v28 = vadd.f32 %v426_v13, %v384_v11  ;;  %v435_v30 = vadd.f32 %v427_v16, %v385_v15  ;;  %v432_v34 = vadd.f32 %v424_v20, %v382_v26 }
  0xb5   : > { %v450_v43 = vpop.permute.xlu1 %449  ;;  %v347_v50 = vpop.permute.xlu0 %346 }
  0xb6   : > { %v476_v31 = vmul.f32 %v465_v17, %v450_v43  ;;  %v477_v32 = vmul.f32 %v469_v18, %v450_v43  ;;  %v380_v47 = vmul.f32 %v1004_v5, %v347_v50  ;;  %v381_v49 = vmul.f32 %v1006_v7, %v347_v50 }
  0xb8   : > { %v484_v44 = vadd.f32 %v476_v31, %v434_v28  ;;  %v485_v45 = vadd.f32 %v477_v32, %v435_v30 }
  0xba   : > { %v984_v46 = vpop.permute.xlu1 %391  ;;  %v442_v62 = vpop.permute.xlu0 %441 }
  0xbb   : > { %v423_v43 = vmul.f32 %v1000_v1, %v984_v46  ;;  %v472_v58 = vmul.f32 %v465_v17, %v442_v62  ;;  %v473_v2 = vmul.f32 %v469_v18, %v442_v62 }
  0xbd   : > { %v431_v0 = vadd.f32 %v423_v43, %v381_v49 }
  0xbf   : > { %v446_v48 = vpop.permute.xlu1 %445  ;;  %v500_v14 = vpop.permute.xlu0 %499  ;;  %v481_v16 = vadd.f32 %v473_v2, %v431_v0 }
  0xc0   : > { %v475_v22 = vmul.f32 %v469_v18, %v446_v48  ;;  %v474_v29 = vmul.f32 %v465_v17, %v446_v48  ;;  %v526_v38 = vmul.f32 %v515_v23, %v500_v14  ;;  %v527_v39 = vmul.f32 %v519_v25, %v500_v14 }
  0xc1   : > { %v422_v48 = vmul.f32 %v415_v8, %v984_v46 }
  0xc2   : > { %v483_v37 = vadd.f32 %v475_v22, %v433_v27  ;;  %v482_v42 = vadd.f32 %v474_v29, %v432_v34  ;;  %v534_v53 = vadd.f32 %v526_v38, %v484_v44  ;;  %v535_v55 = vadd.f32 %v527_v39, %v485_v45 }
  0xc3   : > { %v492_v35 = vpop.permute.xlu0 %491  ;;  %v430_v63 = vadd.f32 %v422_v48, %v380_v47  ;;  %v303_v38 = vmul.f32 0.25, %v932_v6 }
  0xc4   : > { %v995_v56 = vpop.permute.xlu1 %341  ;;  %v522_v10 = vmul.f32 %v515_v23, %v492_v35  ;;  %v523_v11 = vmul.f32 %v519_v25, %v492_v35 }
  0xc5   : > { %v480_v15 = vadd.f32 %v472_v58, %v430_v63  ;;  %v378_v20 = vmul.f32 %v1004_v5, %v995_v56  ;;  %v379_v62 = vmul.f32 %v1006_v7, %v995_v56  ;;  %v334_v7 = vld [vmem:[%s1052_s5] sm:$0xf]  ;;  %v304_v39 = vmul.f32 %v932_v6, %v303_v38 }
  0xc6   : > { %v531_v26 = vadd.f32 %v523_v11, %v481_v16 }
  0xc8   : > { %v549_v51 = vpop.permute.xlu0 %548 }
  0xc9   : > { %v388_v4 = vpop.permute.xlu1 %387 }
  0xca   : > { %v420_v12 = vmul.f32 %v415_v8, %v388_v4  ;;  %v421_v46 = vmul.f32 %v1000_v1, %v388_v4  ;;  %v530_v8 = vadd.f32 %v522_v10, %v480_v15 }
  0xcc   : > { %v428_v1 = vadd.f32 %v420_v12, %v378_v20  ;;  %v429_v4 = vadd.f32 %v421_v46, %v379_v62 }
  0xce   : > { %v496_v21 = vpop.permute.xlu1 %495 }
  0xcf   : > { %v525_v33 = vmul.f32 %v519_v25, %v496_v21  ;;  %v524_v36 = vmul.f32 %v515_v23, %v496_v21 }
  0xd1   : > { %v533_v40 = vadd.f32 %v525_v33, %v483_v37  ;;  %v532_v52 = vadd.f32 %v524_v36, %v482_v42  ;;  %v335_v37 = vmul.f32 %v334_v7, %v953_v24  ;;  %v575_v42 = vpop.permute.xlu0 %574 }
  0xd3   : > { %v438_v41 = vpop.permute.xlu1 %437  ;;  %v561_v59 = vadd.f32 %v549_v51, %v533_v40  ;;  %v560_v3 = vadd.f32 %v549_v51, %v532_v52 }
  0xd4   : > { %v470_v21 = vmul.f32 %v465_v17, %v438_v41  ;;  %v471_v22 = vmul.f32 %v469_v18, %v438_v41  ;;  %v652_v41 = vmul.f32 %v992_v54, %v304_v39 }
  0xd5   : > { %v569_v13 = vmax.f32 %v561_v59, 0.0  ;;  %v568_v19 = vmax.f32 %v560_v3, 0.0 }
  0xd6   : > { %v478_v30 = vadd.f32 %v470_v21, %v428_v1  ;;  %v479_v31 = vadd.f32 %v471_v22, %v429_v4  ;;  %v654_v47 = vcombine.high %v652_v41, %v652_v41 }
  0xd8   : > { %v554_v57 = vpop.permute.xlu1 %553 }
  0xd9   : > { %v562_v60 = vadd.f32 %v554_v57, %v534_v53  ;;  %v563_v61 = vadd.f32 %v554_v57, %v535_v55 }
  0xdb   : > { %v571_v9 = vmax.f32 %v563_v61, 0.0  ;;  %v570_v50 = vmax.f32 %v562_v60, 0.0 }
  0xdd   : > { %v488_v14 = vpop.permute.xlu1 %487  ;;  %605 = vmatprep.subr.mxu0 %v571_v9 }
  0xde   : > { %606 = vmatpush1.msra.mxu0 %v570_v50  ;;  %v520_v27 = vmul.f32 %v515_v23, %v488_v14  ;;  %v521_v28 = vmul.f32 %v519_v25, %v488_v14 }
  0xdf   : > { %607 = vmatprep.subr.mxu0 %v569_v13 }
  0xe0   : > { %608 = vmatpush1.msra.mxu0 %v568_v19  ;;  %v528_v35 = vadd.f32 %v520_v27, %v478_v30  ;;  %v529_v36 = vadd.f32 %v521_v28, %v479_v31 }
  0xe2   : > { %v544_v29 = vpop.permute.xlu1 %543 }
  0xe3   : > { %v558_v32 = vadd.f32 %v544_v29, %v530_v8  ;;  %v559_v33 = vadd.f32 %v544_v29, %v531_v26 }
  0xe5   : > { %v566_v34 = vmax.f32 %v558_v32, 0.0  ;;  %v567_v5 = vmax.f32 %v559_v33, 0.0 }
  0xe6   : > { %v539_v56 = vpop.permute.xlu1 %538 }
  0xe7   : > { %v556_v17 = vadd.f32 %v539_v56, %v528_v35  ;;  %v557_v18 = vadd.f32 %v539_v56, %v529_v36  ;;  %609 = vmatprep.subr.mxu0 %v567_v5 }
  0xe8   : > { %610 = vmatpush1.msra.mxu0 %v566_v34 }
  0xe9   : > { %v564_v23 = vmax.f32 %v556_v17, 0.0  ;;  %v565_v25 = vmax.f32 %v557_v18, 0.0 }
  0xeb   : > { %611 = vmatprep.subr.mxu0 %v565_v25 }
  0xec   : > { %612 = vmatpush1.msra.mxu0 %v564_v23 }
  0xed   : > { %759 = vmatmul.mubr.msk.f32.vlgmr.msra.gmra.mxu0 %vm577_vm0, %v335_v37 }
 0x1ad   : > { %v647_v44 = vpop.f32.mrf.mxu0 }
 0x1ae   : > { %v648_v45 = vadd.f32 %v647_v44, %v575_v42 }
 0x1af   : > { %v649_v40 = vpop.f32.mrf.mxu0 }
 0x1b0   : > { %v650_v49 = vadd.f32 %v649_v40, %v575_v42  ;;  %v656_v48 = vadd.f32 %v652_v41, %v648_v45 }
 0x1b2   : > { %v657_v43 = vadd.f32 %v654_v47, %v650_v49 }
 0x1b4   : > { %v660_v24 = vcombine.low %v656_v48, %v657_v43 }
 0x1b6   : > { %662 = vst [vmem:[%s296_s24] sm:$0xff] %v660_v24 }
 0x1b7 PF: > { %s23_s8 = sadd.s32 1, %s852_s8   ;;  %s1055_s29 = smov %s848_s30 }
 0x1b8   : > { %p20_p10 = scmp.ge.s32.totalorder %s23_s8, 4   ;;  %s1056_s30 = smov %s1058_s0 }
 0x1ba   :  { %22 = sbr.rel (!%p20_p10) target bundleno = 17 (0x11), region = 74 }

</bundles_post_ra>
